<compile_context>
chip_gen: v5e
topology: v5e:2x2
jax: 0.10.0
libtpu: 0.0.40
codegen_flags: <defaults>
</compile_context>

<pallas_src>
import jax
import jax.numpy as jnp
from jax import lax
from jax.experimental import pallas as pl
from jax.experimental.pallas import tpu as pltpu

N_INP = 2
N_H = 30
N_Y = 1

LANE_CHUNK = 512          # lanes per inner-loop chunk; (30, 512) f32 hidden ~ 15 live vregs
MAX_BLOCK_B = 16384       # batch tile (lanes) per grid step; multiple of LANE_CHUNK
PALLAS_MIN_BATCH = 512    # below this, plain XLA fusion wins (dispatch/DMA dominated)


def mlp_kernel(x_ref, w1_ref, b1_ref, w2_ref, b2_ref, o_ref):
    # x_ref:  (N_INP, block_b)  VMEM, batch on lanes
    # w1_ref: (N_H, N_INP)      VMEM, fc1 weight in PyTorch (out, in) layout
    # b1_ref: (N_H, 1)          VMEM
    # w2_ref: (N_H, N_Y)        VMEM, fc2 weight as a column
    # b2_ref: (1, N_Y)          SMEM scalar
    # o_ref:  (N_Y, block_b)    VMEM, lane-dense output
    w1_0 = w1_ref[:, 0:1]                 # (N_H, 1)
    w1_1 = w1_ref[:, 1:2]                 # (N_H, 1)
    b1 = b1_ref[...]                      # (N_H, 1)
    w2 = w2_ref[...]                      # (N_H, N_Y)
    b2 = b2_ref[0, 0]                     # scalar (SMEM)

    block_b = o_ref.shape[-1]
    n_chunks = block_b // LANE_CHUNK      # static (block_b is a multiple of LANE_CHUNK)

    def body(c, carry):
        start = pl.multiple_of(c * LANE_CHUNK, LANE_CHUNK)
        xc = x_ref[:, pl.ds(start, LANE_CHUNK)]                              # (N_INP, C)
        # Layer 1: K=2 contraction as two VPU broadcast-FMAs (no MXU) + ReLU.
        h = jnp.maximum(w1_0 * xc[0:1, :] + w1_1 * xc[1:2, :] + b1, 0.0)     # (N_H, C)
        # Layer 2: N=1 contraction as VPU mul + sublane (XLU) reduce -> lane-dense row.
        y = jnp.sum(h * w2, axis=0, keepdims=True) + b2                      # (1, C)
        o_ref[:, pl.ds(start, LANE_CHUNK)] = y.astype(o_ref.dtype)
        return carry

    lax.fori_loop(0, n_chunks, body, 0, unroll=True)


def _round_up(n, m):
    return ((n + m - 1) // m) * m


def _reference_forward(x, w1, b1, w2, b2):
    return jnp.maximum(x @ w1 + b1, 0.0) @ w2 + b2


def net_forward_pretransposed(x_t, w1, b1, w2, b2, batch=None):
    """x_t: (N_INP, B) f32 -- batch-in-lanes input (skips the wrapper transpose HBM pass).
    Returns (B, N_Y) f32."""
    B = x_t.shape[1] if batch is None else batch
    # Tile choice: big enough to amortize per-grid-step overhead, but ~ceil(B/2) so
    # grid_b >= 2 and the "parallel" axis can shard across v7x's two TensorCores.
    block_b = min(MAX_BLOCK_B, _round_up((B + 1) // 2, LANE_CHUNK))
    b_pad = _round_up(B, block_b)
    grid_b = b_pad // block_b

    if x_t.shape[1] != b_pad:
        x_t = jnp.pad(x_t, ((0, 0), (0, b_pad - x_t.shape[1])))

    w1_t = w1.T                # (N_H, N_INP)
    b1_c = b1.T                # (N_H, 1)

    out_t = pl.pallas_call(
        mlp_kernel,
        out_shape=jax.ShapeDtypeStruct((N_Y, b_pad), jnp.float32),
        grid=(grid_b,),
        in_specs=[
            pl.BlockSpec((N_INP, block_b), lambda i: (0, i)),
            pl.BlockSpec((N_H, N_INP), lambda i: (0, 0)),   # weights stay VMEM-resident
            pl.BlockSpec((N_H, 1), lambda i: (0, 0)),
            pl.BlockSpec((N_H, N_Y), lambda i: (0, 0)),
            pl.BlockSpec(memory_space=pltpu.SMEM),          # b2 scalar via SMEM
        ],
        out_specs=pl.BlockSpec((N_Y, block_b), lambda i: (0, i)),
        compiler_params=pltpu.CompilerParams(
            dimension_semantics=("parallel",)),
    )(x_t, w1_t, b1_c, w2, b2)

    return out_t[:, :B].T                                   # (B, N_Y)


def net_forward(x, w1, b1, w2, b2, use_pallas=None):
    """x: (B, N_INP) f32; w1: (N_INP, N_H); b1: (1, N_H); w2: (N_H, N_Y); b2: (1, N_Y).
    Returns (B, N_Y) f32 == relu(x @ w1 + b1) @ w2 + b2 (same semantics as the PyTorch Net)."""
    B = x.shape[0]
    if use_pallas is None:
        use_pallas = B >= PALLAS_MIN_BATCH
    if not use_pallas:
        # Tiny batches (the real Morse-fit training regime) are dispatch/DMA dominated as a
        # standalone kernel; let XLA fuse the whole 2->30->1 MLP instead.
        return _reference_forward(x, w1, b1, w2, b2)
    # Callers that already hold x as (2, B) should call net_forward_pretransposed directly
    # and skip this extra HBM pass.
    return net_forward_pretransposed(x.T, w1, b1, w2, b2, batch=B)


def init_params(key):
    """Deterministic init mimicking nn.Linear's U(-1/sqrt(fan_in), 1/sqrt(fan_in))."""
    k1, k2, k3, k4 = jax.random.split(key, 4)
    bound1 = 1.0 / jnp.sqrt(jnp.float32(N_INP))
    bound2 = 1.0 / jnp.sqrt(jnp.float32(N_H))
    w1 = jax.random.uniform(k1, (N_INP, N_H), jnp.float32, -bound1, bound1)
    b1 = jax.random.uniform(k2, (1, N_H), jnp.float32, -bound1, bound1)
    w2 = jax.random.uniform(k3, (N_H, N_Y), jnp.float32, -bound2, bound2)
    b2 = jax.random.uniform(k4, (1, N_Y), jnp.float32, -bound2, bound2)
    return w1, b1, w2, b2


if __name__ == "__main__":
    key = jax.random.PRNGKey(0)
    kx1, kx2, kp = jax.random.split(key, 3)

    w1, b1, w2, b2 = init_params(kp)

    # Small batch (realistic Morse-fit regime) -> XLA fallback path.
    x_small = jax.random.uniform(kx1, (8, N_INP), jnp.float32, 0.5, 3.0)
    out_small = jax.block_until_ready(net_forward(x_small, w1, b1, w2, b2))
    ref_small = _reference_forward(x_small, w1, b1, w2, b2)
    assert out_small.shape == (8, N_Y)
    assert jnp.allclose(out_small, ref_small, atol=1e-5, rtol=1e-5)

    # Larger batch -> Pallas path: block_b=1024, grid_b=2 (exercises the batch grid,
    # the chunked inner loop, and the padded tail columns).
    x_big = jax.random.uniform(kx2, (2000, N_INP), jnp.float32, 0.5, 3.0)
    out_big = jax.block_until_ready(net_forward(x_big, w1, b1, w2, b2))
    ref_big = _reference_forward(x_big, w1, b1, w2, b2)
    assert out_big.shape == (2000, N_Y)
    assert jnp.allclose(out_big, ref_big, atol=1e-5, rtol=1e-5)

    print("KERNEL_OK")
</pallas_src>

<mosaic_0001>
module attributes {stable_mosaic.version = 11 : i64} {
  func.func @mlp_kernel(%arg0: i32, %arg1: memref<2x1024xf32, #tpu.memory_space<vmem>>, %arg2: memref<30x2xf32, #tpu.memory_space<vmem>>, %arg3: memref<30x1xf32, #tpu.memory_space<vmem>>, %arg4: memref<30x1xf32, #tpu.memory_space<vmem>>, %arg5: memref<1x1xf32, #tpu.memory_space<smem>>, %arg6: memref<1x1024xf32, #tpu.memory_space<vmem>>) attributes {dimension_semantics = [#tpu.dimension_semantics<parallel>], iteration_bounds = array<i64: 2>, scalar_prefetch = 0 : i64, scratch_operands = 0 : i64, tpu.core_type = #tpu.core_type<tc>, window_params = [{transform_indices = @transform_0, window_bounds = array<i64: 2, 1024>}, {pipeline_mode = #tpu.pipeline_mode<synchronous>, transform_indices = @transform_1, window_bounds = array<i64: 30, 2>}, {pipeline_mode = #tpu.pipeline_mode<synchronous>, transform_indices = @transform_2, window_bounds = array<i64: 30, 1>}, {pipeline_mode = #tpu.pipeline_mode<synchronous>, transform_indices = @transform_3, window_bounds = array<i64: 30, 1>}, {transform_indices = @transform_4, window_bounds = array<i64: 1, 1>}, {transform_indices = @transform_5, window_bounds = array<i64: 1, 1024>}]} {
    %c0 = arith.constant 0 : index
    %c0_0 = arith.constant 0 : index
    %0 = vector.load %arg2[%c0, %c0_0] : memref<30x2xf32, #tpu.memory_space<vmem>>, vector<30x1xf32>
    %c0_1 = arith.constant 0 : index
    %c1 = arith.constant 1 : index
    %1 = vector.load %arg2[%c0_1, %c1] : memref<30x2xf32, #tpu.memory_space<vmem>>, vector<30x1xf32>
    %c0_2 = arith.constant 0 : index
    %c0_3 = arith.constant 0 : index
    %2 = vector.load %arg3[%c0_2, %c0_3] : memref<30x1xf32, #tpu.memory_space<vmem>>, vector<30x1xf32>
    %c0_4 = arith.constant 0 : index
    %c0_5 = arith.constant 0 : index
    %3 = vector.load %arg4[%c0_4, %c0_5] : memref<30x1xf32, #tpu.memory_space<vmem>>, vector<30x1xf32>
    %c0_6 = arith.constant 0 : index
    %c0_7 = arith.constant 0 : index
    %4 = memref.load %arg5[%c0_6, %c0_7] : memref<1x1xf32, #tpu.memory_space<smem>>
    %c0_i32 = arith.constant 0 : i32
    %c512_i32 = arith.constant 512 : i32
    %5 = arith.muli %c0_i32, %c512_i32 : i32
    %6 = tpu.assume_multiple %5, 512 : i32
    %c0_8 = arith.constant 0 : index
    %7 = arith.index_cast %6 : i32 to index
    %8 = vector.load %arg1[%c0_8, %7] : memref<2x1024xf32, #tpu.memory_space<vmem>>, vector<2x512xf32>
    %9 = vector.extract_strided_slice %8 {offsets = [0, 0], sizes = [1, 512], strides = [1, 1]} : vector<2x512xf32> to vector<1x512xf32>
    %10 = vector.broadcast %0 : vector<30x1xf32> to vector<30x512xf32>
    %11 = vector.broadcast %9 : vector<1x512xf32> to vector<30x512xf32>
    %12 = arith.mulf %10, %11 : vector<30x512xf32>
    %13 = vector.extract_strided_slice %8 {offsets = [1, 0], sizes = [1, 512], strides = [1, 1]} : vector<2x512xf32> to vector<1x512xf32>
    %14 = vector.broadcast %1 : vector<30x1xf32> to vector<30x512xf32>
    %15 = vector.broadcast %13 : vector<1x512xf32> to vector<30x512xf32>
    %16 = arith.mulf %14, %15 : vector<30x512xf32>
    %17 = arith.addf %12, %16 : vector<30x512xf32>
    %18 = vector.broadcast %2 : vector<30x1xf32> to vector<30x512xf32>
    %19 = arith.addf %17, %18 : vector<30x512xf32>
    %cst = arith.constant 0.000000e+00 : f32
    %20 = vector.broadcast %cst : f32 to vector<30x512xf32>
    %21 = arith.maximumf %19, %20 : vector<30x512xf32>
    %22 = vector.broadcast %3 : vector<30x1xf32> to vector<30x512xf32>
    %23 = arith.mulf %21, %22 : vector<30x512xf32>
    %cst_9 = arith.constant dense<0.000000e+00> : vector<512xf32>
    %24 = vector.multi_reduction <add>, %23, %cst_9 [0] : vector<30x512xf32> to vector<512xf32>
    %25 = vector.shape_cast %24 : vector<512xf32> to vector<1x512xf32>
    %26 = vector.broadcast %4 : f32 to vector<1x512xf32>
    %27 = arith.addf %25, %26 : vector<1x512xf32>
    %c0_10 = arith.constant 0 : index
    %28 = arith.index_cast %6 : i32 to index
    %29 = vector.load %arg6[%c0_10, %28] : memref<1x1024xf32, #tpu.memory_space<vmem>>, vector<1x512xf32>
    tpu.vector_store %arg6[%c0_10, %28], %27 {strides = array<i32>} : memref<1x1024xf32, #tpu.memory_space<vmem>>, vector<1x512xf32>,
    %c1_i32 = arith.constant 1 : i32
    %c512_i32_11 = arith.constant 512 : i32
    %30 = arith.muli %c1_i32, %c512_i32_11 : i32
    %31 = tpu.assume_multiple %30, 512 : i32
    %c0_12 = arith.constant 0 : index
    %32 = arith.index_cast %31 : i32 to index
    %33 = vector.load %arg1[%c0_12, %32] : memref<2x1024xf32, #tpu.memory_space<vmem>>, vector<2x512xf32>
    %34 = vector.extract_strided_slice %33 {offsets = [0, 0], sizes = [1, 512], strides = [1, 1]} : vector<2x512xf32> to vector<1x512xf32>
    %35 = vector.broadcast %0 : vector<30x1xf32> to vector<30x512xf32>
    %36 = vector.broadcast %34 : vector<1x512xf32> to vector<30x512xf32>
    %37 = arith.mulf %35, %36 : vector<30x512xf32>
    %38 = vector.extract_strided_slice %33 {offsets = [1, 0], sizes = [1, 512], strides = [1, 1]} : vector<2x512xf32> to vector<1x512xf32>
    %39 = vector.broadcast %1 : vector<30x1xf32> to vector<30x512xf32>
    %40 = vector.broadcast %38 : vector<1x512xf32> to vector<30x512xf32>
    %41 = arith.mulf %39, %40 : vector<30x512xf32>
    %42 = arith.addf %37, %41 : vector<30x512xf32>
    %43 = vector.broadcast %2 : vector<30x1xf32> to vector<30x512xf32>
    %44 = arith.addf %42, %43 : vector<30x512xf32>
    %cst_13 = arith.constant 0.000000e+00 : f32
    %45 = vector.broadcast %cst_13 : f32 to vector<30x512xf32>
    %46 = arith.maximumf %44, %45 : vector<30x512xf32>
    %47 = vector.broadcast %3 : vector<30x1xf32> to vector<30x512xf32>
    %48 = arith.mulf %46, %47 : vector<30x512xf32>
    %cst_14 = arith.constant dense<0.000000e+00> : vector<512xf32>
    %49 = vector.multi_reduction <add>, %48, %cst_14 [0] : vector<30x512xf32> to vector<512xf32>
    %50 = vector.shape_cast %49 : vector<512xf32> to vector<1x512xf32>
    %51 = vector.broadcast %4 : f32 to vector<1x512xf32>
    %52 = arith.addf %50, %51 : vector<1x512xf32>
    %c0_15 = arith.constant 0 : index
    %53 = arith.index_cast %31 : i32 to index
    %54 = vector.load %arg6[%c0_15, %53] : memref<1x1024xf32, #tpu.memory_space<vmem>>, vector<1x512xf32>
    tpu.vector_store %arg6[%c0_15, %53], %52 {strides = array<i32>} : memref<1x1024xf32, #tpu.memory_space<vmem>>, vector<1x512xf32>,
    %c2_i32 = arith.constant 2 : i32
    return
  }
  func.func @transform_0(%arg0: i32) -> (i32, i32) {
    %c0_i32 = arith.constant 0 : i32
    %c0_i32_0 = arith.constant 0 : i32
    return %c0_i32, %arg0 : i32, i32
  }
  func.func @transform_1(%arg0: i32) -> (i32, i32) {
    %c0_i32 = arith.constant 0 : i32
    %c0_i32_0 = arith.constant 0 : i32
    %c0_i32_1 = arith.constant 0 : i32
    return %c0_i32, %c0_i32_0 : i32, i32
  }
  func.func @transform_2(%arg0: i32) -> (i32, i32) {
    %c0_i32 = arith.constant 0 : i32
    %c0_i32_0 = arith.constant 0 : i32
    %c0_i32_1 = arith.constant 0 : i32
    return %c0_i32, %c0_i32_0 : i32, i32
  }
  func.func @transform_3(%arg0: i32) -> (i32, i32) {
    %c0_i32 = arith.constant 0 : i32
    %c0_i32_0 = arith.constant 0 : i32
    %c0_i32_1 = arith.constant 0 : i32
    return %c0_i32, %c0_i32_0 : i32, i32
  }
  func.func @transform_4(%arg0: i32) -> (i32, i32) {
    %c0_i32 = arith.constant 0 : i32
    %c0_i32_0 = arith.constant 0 : i32
    %c0_i32_1 = arith.constant 0 : i32
    return %c0_i32, %c0_i32_0 : i32, i32
  }
  func.func @transform_5(%arg0: i32) -> (i32, i32) {
    %c0_i32 = arith.constant 0 : i32
    %c0_i32_0 = arith.constant 0 : i32
    return %c0_i32, %arg0 : i32, i32
  }
}

</mosaic_0001>

<bundles_post_ra>
// kernel: tpu_custom_call.1
= control target key start
LH: loop header
LB: loop body
LE: loop exit
PB: predicated region body
PF: predicated region fallthrough
CT: control target
= control target key end

     0   :  { %s1340_s0 = inlined_call_operand.vmem [shape: f32[2,2048], index: 0, kind: input, shape index: {}]   ;;  %s1341_s1 = inlined_call_operand.vmem [shape: f32[30,2], index: 1, kind: input, shape index: {}]   ;;  %s1342_s2 = inlined_call_operand.vmem [shape: f32[30,1], index: 2, kind: input, shape index: {}]   ;;  %s1343_s3 = inlined_call_operand.vmem [shape: f32[30,1], index: 3, kind: input, shape index: {}]   ;;  %s1344_s4 = inlined_call_operand.<no memory space> [shape: f32[1,1], index: 4, kind: input, shape index: {}]   ;;  %s1345_s5 = inlined_call_operand.hbm [shape: f32[1,2048], index: 5, kind: output, shape index: {}]  }
   0x1   :  { %10 = sst [smem:[#allocation2]] %s1344_s4 }
   0x2   :  { %11 = vsyncpa [#allocation4], 0 }
   0x3   :  { %13 = vsyncpa [#allocation4 + $0x1], 0  ;;  %s918_s20 = smov 0   ;;  %s920_s21 = smov 0  }
   0x4   :  { %s922_s22 = smov 0   ;;  %s924_s23 = smov 0  }
   0x5 LB: > { %s757_s4 = sadd.s32 4294967295, %s881_s23   ;;  %s758_s24 = sadd.s32 4294967294, %s881_s23   ;;  %s881_s23 = sphi %s924_s23, %s1363_s23   ;;  %s877_s22 = sphi %s922_s22, %s1362_s22   ;;  %s873_s21 = sphi %s920_s21, %s1361_s21   ;;  %s869_s20 = sphi %s918_s20, %s1360_s20  }
   0x6   : > { %s941_s25 = sadd.s32 1, %s881_s23   ;;  %s136_s26 = sadd.s32 1, %s877_s22 }
   0x7   : > { %s133_s27 = ssub.s32 %s881_s23, %s941_s25  ;;  %p146_p0 = scmp.ne.s32.totalorder %s877_s22, %s873_s21 }
   0x8   : > { %p134_p1 = scmp.eq.s32.totalorder %s133_s27, 0  ;;  %p147_p2 = scmp.eq.s32.totalorder %s757_s4, 1 }
   0x9   : > { %p152_p3 = scmp.ne.s32.totalorder %s873_s21, %s869_s20  ;;  %p153_p4 = scmp.eq.s32.totalorder %s758_s24, 1 }
   0xa   : > { %s953_s28 = scalar_select %p134_p1, %s877_s22, %s136_s26  }
   0xb   : > { %p955_p5 = por %p147_p2, %p146_p0  ;;  %p959_p6 = por %p153_p4, %p152_p3 }
   0xc   : > { %p761_p7 = scmp.ge.s32.totalorder %s881_s23, 1  ;;  %p192_p8 = scmp.lt.s32.totalorder %s881_s23, 3 }
   0xe   : > { %p193_p9 = pnand %p761_p7, %p192_p8 }
  0x10   : > { %196 = sbr.rel (%p193_p9) target bundleno = 224 (0xe0), region = 40 }
  0x15   : > { %v229_v0 = vld [vmem:[%s1341_s1 + $0x10] sm:$0xff]  ;;  %v883_v1 = vmov 1   ;;  %v884_v2 = vmov 0   ;;  %v227_v3 = vld [vmem:[%s1341_s1] sm:$0xff]  ;;  %v230_v4 = vld [vmem:[%s1341_s1 + $0x18] sm:$0x3f] }
  0x16   : > { %814 = vset.pattern.permute.xlu0 %v883_v1  ;;  %812 = vset.pattern.permute.xlu1 %v884_v2  ;;  %v228_v5 = vld [vmem:[%s1341_s1 + $0x8] sm:$0xff]  ;;  %v231_v6 = vld [vmem:[%s1342_s2] sm:$0xff]  ;;  %v234_v7 = vld [vmem:[%s1342_s2 + $0x18] sm:$0x3f]  ;;  %s1003_s13 = sshll.u32 %s757_s4, 3  ;;  %vm440_vm0 = vcmask 1045504  }
  0x17   : > { %299 = vperm.xlu0 %814, %v229_v0   ;;  %253 = vperm.xlu1 %812, %v229_v0   ;;  %v232_v8 = vld [vmem:[%s1342_s2 + $0x8] sm:$0xff]  ;;  %v233_v9 = vld [vmem:[%s1342_s2 + $0x10] sm:$0xff]  ;;  %v235_v10 = vld [vmem:[%s1343_s3] sm:$0xff]  ;;  %p221_p10 = scmp.lt.s32.totalorder %s1003_s13, 15  ;;  %s1218_s4 = sld [smem:[#allocation2]]  ;;  %vm491_vm1 = vcmask 1040384  }
  0x18   : > { %813 = vset.pattern.permute.xlu2 %v883_v1  ;;  %v236_v11 = vld [vmem:[%s1343_s3 + $0x8] sm:$0xff]  ;;  %v237_v12 = vld [vmem:[%s1343_s3 + $0x10] sm:$0xff]  ;;  %v238_v13 = vld [vmem:[%s1343_s3 + $0x18] sm:$0x3f]  ;;  %vm493_vm2 = vcmask 1042434   ;;  %vm495_vm3 = vcmask 1041408   ;;  %s694_s7 = scalar_lea.hbm %s1345_s5, %s1003_s13 }
  0x19   : > { %291 = vperm.xlu2 %813, %v227_v3   ;;  %s222_s14 = scalar_select %p221_p10, %s1003_s13, 15 }
  0x1a   : > { %s217_s19 = sand.u32 1, %s873_s21   ;;  %s698_s9 = sshll.u32 %s694_s7, 4  ;;  %s699_s9 = int_to_ptr.hbm [resolvable:$true] %s698_s9 }
  0x1b   : > { %s764_s15 = sshll.u32 %s222_s14, 1  ;;  %s762_s24 = sshll.u32 %s217_s19, 3 }
  0x1c   : > { %s224_s18 = scalar_lea.vmem %s1340_s0, %s764_s15  ;;  %s219_s26 = scalar_lea.vmem [#allocation3], %s762_s24 }
  0x1d   : > { %v240_v16 = vld [vmem:[%s224_s18] sm:$0xff]  ;;  %v765_v17 = vld [vmem:[%s224_s18 + $0x8] sm:$0xff]  ;;  %s696_s8 = sshll.u32 %s219_s26, 4  ;;  %s684_s10 = scalar_lea.sflag [#allocation4], %s217_s19  ;;  %s697_s8 = int_to_ptr.vmem [resolvable:$true] %s696_s8 }
  0x1e   : > { %v262_v18 = vperm.slane %v240_v16, 0  ;;  %v263_v19 = vperm.slane %v240_v16, 2  ;;  %v264_v20 = vperm.slane %v240_v16, 4  ;;  %v265_v21 = vperm.slane %v240_v16, 6  ;;  %s833_s11 = sshra.s32 %s699_s9, 4  ;;  %s839_s15 = scalar_lea.hbm %s1345_s5, 16  ;;  %s834_s11 = int_to_ptr.hbm [resolvable:$true] %s833_s11 }
  0x1f   : > { %815 = vset.pattern.permute.xlu0 %v884_v2  ;;  %258 = vperm.xlu1 %812, %v230_v4   ;;  %v306_v22 = vperm.slane %v240_v16, 1  ;;  %v307_v23 = vperm.slane %v240_v16, 3  ;;  %v308_v24 = vperm.slane %v240_v16, 5  ;;  %v309_v25 = vperm.slane %v240_v16, 7  ;;  %s835_s12 = scalar_lea.hbm %s834_s11, 8  ;;  %p840_p0 = scmp.lt.s32.totalorder %s834_s11, %s1345_s5 }
  0x20   : > { %243 = vperm.xlu0 %815, %v227_v3   ;;  %v506_v26 = vperm.slane %v765_v17, 0  ;;  %v507_v27 = vperm.slane %v765_v17, 2  ;;  %v508_v28 = vperm.slane %v765_v17, 4  ;;  %v509_v29 = vperm.slane %v765_v17, 6  ;;  %p836_p11 = scmp.ne.s32.totalorder %s834_s11, %s835_s12  ;;  %p841_p1 = scmp.lt.s32.totalorder %s839_s15, %s835_s12 }
  0x21   : > { %295 = vperm.xlu2 %813, %v228_v5   ;;  %v534_v30 = vperm.slane %v765_v17, 1  ;;  %v535_v31 = vperm.slane %v765_v17, 3  ;;  %v536_v32 = vperm.slane %v765_v17, 5  ;;  %v537_v33 = vperm.slane %v765_v17, 7 }
  0x22   : > { %v1012_v34 = vperm.slane %v262_v18, 0  ;;  %v1014_v35 = vperm.slane %v263_v19, 0  ;;  %v1016_v36 = vperm.slane %v264_v20, 0  ;;  %v1018_v37 = vperm.slane %v265_v21, 0  ;;  %p837_p12 = pnand %p836_p11, %p955_p5  ;;  %p842_p2 = por %p841_p1, %p840_p0 }
  0x23   : > { %v1022_v39 = vperm.slane %v306_v22, 1  ;;  %v1024_v40 = vperm.slane %v307_v23, 1  ;;  %v1026_v41 = vperm.slane %v308_v24, 1  ;;  %v1028_v42 = vperm.slane %v309_v25, 1 }
  0x24   : > { %v1030_v43 = vperm.slane %v506_v26, 0  ;;  %v1032_v44 = vperm.slane %v507_v27, 0  ;;  %v1034_v45 = vperm.slane %v508_v28, 0  ;;  %v1036_v46 = vperm.slane %v509_v29, 0  ;;  %p838_p13 = pneg %p837_p12 }
  0x25   : > { %v1038_v47 = vperm.slane %v534_v30, 1  ;;  %v1040_v48 = vperm.slane %v535_v31, 1  ;;  %v1042_v49 = vperm.slane %v536_v32, 1  ;;  %v1044_v50 = vperm.slane %v537_v33, 1 }
  0x26   : > { %p843_p3 = pnand %p842_p2, %p838_p13 }
  0x27   : > { %816 = vset.pattern.permute.xlu1 %v883_v1 }
  0x28   : > { %303 = vperm.xlu1 %816, %v230_v4   ;;  %248 = vperm.xlu0 %815, %v228_v5  }
  0x29   : > { %817 = vset.pattern.permute.xlu2 %v884_v2 }
  0x2a   : > { %352 = vperm.xlu2 %817, %v231_v6  }
  0x30   : > { %818 = vset.pattern.permute.xlu1 %v884_v2  ;;  %367 = vperm.xlu0 %815, %v234_v7  }
  0x31   : > { %357 = vperm.xlu1 %818, %v232_v8  }
  0x32   : > { %362 = vperm.xlu2 %817, %v233_v9  }
  0x39   : > { %404 = vperm.xlu1 %818, %v235_v10  }
  0x3a   : > { %409 = vperm.xlu2 %817, %v236_v11  }
  0x41   : > { %414 = vperm.xlu1 %818, %v237_v12  }
  0x42   : > { %419 = vperm.xlu2 %817, %v238_v13  }
  0x73   : > { %v292_v14 = vpop.permute.xlu2 %291 }
  0x74   : > { %v318_v51 = vmul.f32 %v1022_v39, %v292_v14  ;;  %v319_v52 = vmul.f32 %v1024_v40, %v292_v14  ;;  %v320_v53 = vmul.f32 %v1026_v41, %v292_v14  ;;  %v321_v54 = vmul.f32 %v1028_v42, %v292_v14 }
  0x75   : > { %v1051_v55 = vmul.f32 %v1038_v47, %v292_v14  ;;  %v1054_v56 = vmul.f32 %v1040_v48, %v292_v14  ;;  %v1057_v57 = vmul.f32 %v1042_v49, %v292_v14  ;;  %v1060_v58 = vmul.f32 %v1044_v50, %v292_v14 }
  0x7b   : > { %v1010_v15 = vpop.permute.xlu2 %295 }
  0x7c   : > { %v1064_v61 = vmul.f32 %v1022_v39, %v1010_v15  ;;  %v1068_v62 = vmul.f32 %v1024_v40, %v1010_v15  ;;  %v1072_v63 = vmul.f32 %v1026_v41, %v1010_v15  ;;  %v1076_v0 = vmul.f32 %v1028_v42, %v1010_v15 }
  0x7d   : > { %v1110_v27 = vmul.f32 %v1038_v47, %v1010_v15  ;;  %v1114_v28 = vmul.f32 %v1040_v48, %v1010_v15  ;;  %v1118_v29 = vmul.f32 %v1042_v49, %v1010_v15  ;;  %v1122_v30 = vmul.f32 %v1044_v50, %v1010_v15 }
  0x84   : > { %v1020_v38 = vpop.permute.xlu2 %352 }
  0x89   : > { %v300_v59 = vpop.permute.xlu0 %299  ;;  %v254_v60 = vpop.permute.xlu1 %253 }
  0x8a   : > { %v282_v1 = vmul.f32 %v1012_v34, %v254_v60  ;;  %v283_v2 = vmul.f32 %v1014_v35, %v254_v60  ;;  %v284_v3 = vmul.f32 %v1016_v36, %v254_v60  ;;  %v285_v4 = vmul.f32 %v1018_v37, %v254_v60 }
  0x8b   : > { %v326_v5 = vmul.f32 %v1022_v39, %v300_v59  ;;  %v327_v6 = vmul.f32 %v1024_v40, %v300_v59  ;;  %v328_v7 = vmul.f32 %v1026_v41, %v300_v59  ;;  %v329_v8 = vmul.f32 %v1028_v42, %v300_v59 }
  0x8c   : > { %v1086_v9 = vpop.permute.xlu2 %362  ;;  %v526_v10 = vmul.f32 %v1030_v43, %v254_v60  ;;  %v527_v11 = vmul.f32 %v1032_v44, %v254_v60  ;;  %v528_v12 = vmul.f32 %v1034_v45, %v254_v60  ;;  %v529_v13 = vmul.f32 %v1036_v46, %v254_v60 }
  0x8d   : > { %v342_v14 = vadd.f32 %v326_v5, %v282_v1  ;;  %v343_v16 = vadd.f32 %v327_v6, %v283_v2  ;;  %v344_v17 = vadd.f32 %v328_v7, %v284_v3  ;;  %v345_v18 = vadd.f32 %v329_v8, %v285_v4 }
  0x8e   : > { %v554_v19 = vmul.f32 %v1038_v47, %v300_v59  ;;  %v555_v20 = vmul.f32 %v1040_v48, %v300_v59  ;;  %v556_v21 = vmul.f32 %v1042_v49, %v300_v59  ;;  %v557_v22 = vmul.f32 %v1044_v50, %v300_v59 }
  0x8f   : > { %v1097_v23 = vadd.f32 %v1086_v9, %v342_v14  ;;  %v1100_v24 = vadd.f32 %v1086_v9, %v343_v16  ;;  %v1103_v25 = vadd.f32 %v1086_v9, %v344_v17  ;;  %v1106_v26 = vadd.f32 %v1086_v9, %v345_v18 }
  0x90   : > { %v1124_v32 = vadd.f32 %v554_v19, %v526_v10  ;;  %v1126_v33 = vadd.f32 %v555_v20, %v527_v11  ;;  %v1128_v59 = vadd.f32 %v556_v21, %v528_v12  ;;  %v1130_v60 = vadd.f32 %v557_v22, %v529_v13 }
  0x91   : > { %1349 = vst [vmem:[#allocation6_spill] sm:$0xff] %v1106_v26  ;;  %v259_v31 = vpop.permute.xlu1 %258 }
  0x92   : > { %v244_v1 = vpop.permute.xlu0 %243  ;;  %v286_v19 = vmul.f32 %v1012_v34, %v259_v31  ;;  %v287_v20 = vmul.f32 %v1014_v35, %v259_v31  ;;  %v288_v21 = vmul.f32 %v1016_v36, %v259_v31  ;;  %v289_v22 = vmul.f32 %v1018_v37, %v259_v31 }
  0x93   : > { %v274_v15 = vmul.f32 %v1012_v34, %v244_v1  ;;  %v275_v6 = vmul.f32 %v1014_v35, %v244_v1  ;;  %v276_v7 = vmul.f32 %v1016_v36, %v244_v1  ;;  %v277_v8 = vmul.f32 %v1018_v37, %v244_v1 }
  0x94   : > { %v518_v10 = vmul.f32 %v1030_v43, %v244_v1  ;;  %v519_v11 = vmul.f32 %v1032_v44, %v244_v1  ;;  %v520_v12 = vmul.f32 %v1034_v45, %v244_v1  ;;  %v521_v13 = vmul.f32 %v1036_v46, %v244_v1 }
  0x95   : > { %v334_v14 = vadd.f32 %v318_v51, %v274_v15  ;;  %v335_v16 = vadd.f32 %v319_v52, %v275_v6  ;;  %v336_v17 = vadd.f32 %v320_v53, %v276_v7  ;;  %v337_v18 = vadd.f32 %v321_v54, %v277_v8 }
  0x96   : > { %v1161_v52 = vmul.f32 %v1030_v43, %v259_v31  ;;  %v1164_v53 = vmul.f32 %v1032_v44, %v259_v31  ;;  %v1167_v54 = vmul.f32 %v1034_v45, %v259_v31  ;;  %v1170_v15 = vmul.f32 %v1036_v46, %v259_v31 }
  0x97   : > { %v1149_v5 = vadd.f32 %v1020_v38, %v334_v14  ;;  %v1152_v4 = vadd.f32 %v1020_v38, %v335_v16  ;;  %v1155_v1 = vadd.f32 %v1020_v38, %v336_v17  ;;  %v1158_v51 = vadd.f32 %v1020_v38, %v337_v18 }
  0x98   : > { %v562_v6 = vadd.f32 %v1051_v55, %v518_v10  ;;  %v563_v7 = vadd.f32 %v1054_v56, %v519_v11  ;;  %v564_v8 = vadd.f32 %v1057_v57, %v520_v12  ;;  %v565_v14 = vadd.f32 %v1060_v58, %v521_v13  ;;  %v1184_v10 = vpop.permute.xlu2 %409 }
  0x99   : > { %v386_v18 = vmax.f32 %v1149_v5, 0.0 }
  0x9a   : > { %v304_v16 = vpop.permute.xlu1 %303  ;;  %v249_v17 = vpop.permute.xlu0 %248  ;;  %v1191_v26 = vadd.f32 %v562_v6, %v1020_v38 }
  0x9b   : > { %v278_v31 = vmul.f32 %v1012_v34, %v249_v17  ;;  %v279_v55 = vmul.f32 %v1014_v35, %v249_v17  ;;  %v280_v56 = vmul.f32 %v1016_v36, %v249_v17  ;;  %v281_v57 = vmul.f32 %v1018_v37, %v249_v17 }
  0x9c   : > { %v330_v58 = vmul.f32 %v1022_v39, %v304_v16  ;;  %v331_v11 = vmul.f32 %v1024_v40, %v304_v16  ;;  %v332_v12 = vmul.f32 %v1026_v41, %v304_v16  ;;  %v333_v13 = vmul.f32 %v1028_v42, %v304_v16 }
  0x9d   : > { %v1194_v34 = vadd.f32 %v563_v7, %v1020_v38  ;;  %v1197_v35 = vadd.f32 %v564_v8, %v1020_v38  ;;  %v1200_v36 = vadd.f32 %v565_v14, %v1020_v38  ;;  %v338_v37 = vadd.f32 %v1064_v61, %v278_v31 }
  0x9e   : > { %v339_v39 = vadd.f32 %v1068_v62, %v279_v55  ;;  %v340_v40 = vadd.f32 %v1072_v63, %v280_v56  ;;  %v341_v41 = vadd.f32 %v1076_v0, %v281_v57  ;;  %v522_v42 = vmul.f32 %v1030_v43, %v249_v17 }
  0x9f   : > { %v523_v6 = vmul.f32 %v1032_v44, %v249_v17  ;;  %v524_v7 = vmul.f32 %v1034_v45, %v249_v17  ;;  %v525_v8 = vmul.f32 %v1036_v46, %v249_v17  ;;  %v346_v2 = vadd.f32 %v330_v58, %v286_v19 }
  0xa0   : > { %v347_v38 = vadd.f32 %v331_v11, %v287_v20  ;;  %v348_v14 = vadd.f32 %v332_v12, %v288_v21  ;;  %v349_v3 = vadd.f32 %v333_v13, %v289_v22  ;;  %v558_v61 = vmul.f32 %v1038_v47, %v304_v16 }
  0xa1   : > { %v559_v62 = vmul.f32 %v1040_v48, %v304_v16  ;;  %v560_v63 = vmul.f32 %v1042_v49, %v304_v16  ;;  %v561_v0 = vmul.f32 %v1044_v50, %v304_v16  ;;  %v566_v43 = vadd.f32 %v1110_v27, %v522_v42 }
  0xa2   : > { %v368_v31 = vpop.permute.xlu0 %367  ;;  %v567_v44 = vadd.f32 %v1114_v28, %v523_v6  ;;  %v568_v45 = vadd.f32 %v1118_v29, %v524_v7  ;;  %v569_v46 = vadd.f32 %v1122_v30, %v525_v8  ;;  %v1220_v28 = vpop.permute.xlu2 %419  ;;  %v574_v13 = vadd.f32 %v558_v61, %v1161_v52 }
  0xa3   : > { %v358_v19 = vpop.permute.xlu1 %357  ;;  %v382_v20 = vadd.f32 %v368_v31, %v346_v2  ;;  %v383_v47 = vadd.f32 %v368_v31, %v347_v38  ;;  %v384_v21 = vadd.f32 %v368_v31, %v348_v14  ;;  %v385_v48 = vadd.f32 %v368_v31, %v349_v3 }
  0xa4   : > { %v374_v22 = vadd.f32 %v358_v19, %v338_v37  ;;  %v375_v49 = vadd.f32 %v358_v19, %v339_v39  ;;  %v376_v17 = vadd.f32 %v358_v19, %v340_v40  ;;  %v377_v50 = vadd.f32 %v358_v19, %v341_v41 }
  0xa5   : > { %v398_v16 = vmax.f32 %v382_v20, 0.0  ;;  %v399_v55 = vmax.f32 %v383_v47, 0.0  ;;  %v400_v27 = vmax.f32 %v384_v21, 0.0  ;;  %v401_v56 = vmax.f32 %v385_v48, 0.0 }
  0xa6   : > { %v390_v29 = vmax.f32 %v374_v22, 0.0  ;;  %v391_v57 = vmax.f32 %v375_v49, 0.0  ;;  %v392_v30 = vmax.f32 %v376_v17, 0.0  ;;  %v393_v58 = vmax.f32 %v377_v50, 0.0 }
  0xa7   : > { %v434_v11 = vmul.f32 %v1220_v28, %v398_v16  ;;  %v435_v2 = vmul.f32 %v1220_v28, %v399_v55  ;;  %v436_v3 = vmul.f32 %v1220_v28, %v400_v27  ;;  %v437_v12 = vmul.f32 %v1220_v28, %v401_v56 }
  0xa8   : > { %v575_v37 = vadd.f32 %v559_v62, %v1164_v53  ;;  %v576_v39 = vadd.f32 %v560_v63, %v1167_v54  ;;  %v577_v40 = vadd.f32 %v561_v0, %v1170_v15  ;;  %v426_v41 = vmul.f32 %v1184_v10, %v390_v29 }
  0xa9   : > { %v427_v42 = vmul.f32 %v1184_v10, %v391_v57  ;;  %v428_v6 = vmul.f32 %v1184_v10, %v392_v30  ;;  %v429_v7 = vmul.f32 %v1184_v10, %v393_v58  ;;  %v441_v8 = vsel %vm440_vm0, %v434_v11, 0.0 }
  0xaa   : > { %v451_v38 = vsel %vm440_vm0, %v435_v2, 0.0  ;;  %v461_v52 = vsel %vm440_vm0, %v436_v3, 0.0  ;;  %v471_v53 = vsel %vm440_vm0, %v437_v12, 0.0  ;;  %v1239_v54 = vstv %s1218_s4 }
  0xab   : > { %v405_v14 = vpop.permute.xlu1 %404  ;;  %v498_v15 = vlaneseq  ;;  %v582_v61 = vadd.f32 %v566_v43, %v358_v19  ;;  %v583_v62 = vadd.f32 %v567_v44, %v358_v19  ;;  %v1350_v0 = vmax.f32 %v1152_v4, 0.0 }
  0xac   : > { %v422_v63 = vmul.f32 %v405_v14, %v386_v18  ;;  %v1351_v47 = vmax.f32 %v1155_v1, 0.0  ;;  %v1352_v48 = vmax.f32 %v1158_v51, 0.0  ;;  %v584_v49 = vadd.f32 %v568_v45, %v358_v19 }
  0xad   : > { %v423_v20 = vmul.f32 %v405_v14, %v1350_v0  ;;  %v585_v17 = vadd.f32 %v569_v46, %v358_v19  ;;  %v586_v50 = vadd.f32 %v1124_v32, %v1086_v9  ;;  %v587_v43 = vadd.f32 %v1126_v33, %v1086_v9 }
  0xae   : > { %v424_v21 = vmul.f32 %v405_v14, %v1351_v47  ;;  %v425_v22 = vmul.f32 %v405_v14, %v1352_v48  ;;  %v438_v44 = vadd.f32 %v426_v41, %v422_v63  ;;  %v588_v4 = vadd.f32 %v1128_v59, %v1086_v9 }
  0xaf   : > { %v449_v5 = vadd.f32 %v427_v42, %v423_v20  ;;  %v589_v1 = vadd.f32 %v1130_v60, %v1086_v9  ;;  %v590_v51 = vadd.f32 %v574_v13, %v368_v31  ;;  %v591_v55 = vadd.f32 %v575_v37, %v368_v31  ;;  %v1356_v13 = vld [vmem:[#allocation6_spill] sm:$0xff] }
  0xb0   : > { %v459_v18 = vadd.f32 %v428_v6, %v424_v21  ;;  %v469_v16 = vadd.f32 %v429_v7, %v425_v22  ;;  %v592_v45 = vadd.f32 %v576_v39, %v368_v31  ;;  %v593_v46 = vadd.f32 %v577_v40, %v368_v31 }
  0xb1   : > { %v594_v19 = vmax.f32 %v1191_v26, 0.0  ;;  %v595_v32 = vmax.f32 %v1194_v34, 0.0  ;;  %v596_v33 = vmax.f32 %v1197_v35, 0.0  ;;  %v597_v27 = vmax.f32 %v1200_v36, 0.0 }
  0xb2   : > { %v598_v56 = vmax.f32 %v582_v61, 0.0  ;;  %v599_v29 = vmax.f32 %v583_v62, 0.0  ;;  %v600_v57 = vmax.f32 %v584_v49, 0.0  ;;  %v601_v30 = vmax.f32 %v585_v17, 0.0 }
  0xb3   : > { %v602_v59 = vmax.f32 %v586_v50, 0.0  ;;  %v603_v58 = vmax.f32 %v587_v43, 0.0  ;;  %v415_v11 = vpop.permute.xlu1 %414  ;;  %v604_v9 = vmax.f32 %v588_v4, 0.0  ;;  %v605_v60 = vmax.f32 %v589_v1, 0.0 }
  0xb4   : > { %v606_v2 = vmax.f32 %v590_v51, 0.0  ;;  %v607_v3 = vmax.f32 %v591_v55, 0.0  ;;  %v1353_v31 = vmax.f32 %v1097_v23, 0.0  ;;  %v1354_v34 = vmax.f32 %v1100_v24, 0.0 }
  0xb5   : > { %v1355_v35 = vmax.f32 %v1103_v25, 0.0  ;;  %v1357_v37 = vmax.f32 %v1356_v13, 0.0  ;;  %v608_v40 = vmax.f32 %v592_v45, 0.0  ;;  %v609_v41 = vmax.f32 %v593_v46, 0.0 }
  0xb6   : > { %v430_v26 = vmul.f32 %v415_v11, %v1353_v31  ;;  %v431_v12 = vmul.f32 %v415_v11, %v1354_v34  ;;  %v610_v42 = vmul.f32 %v594_v19, %v405_v14  ;;  %v611_v6 = vmul.f32 %v595_v32, %v405_v14 }
  0xb7   : > { %v432_v36 = vmul.f32 %v415_v11, %v1355_v35  ;;  %v433_v39 = vmul.f32 %v415_v11, %v1357_v37  ;;  %v612_v0 = vmul.f32 %v596_v33, %v405_v14  ;;  %v613_v23 = vmul.f32 %v597_v27, %v405_v14 }
  0xb8   : > { %v439_v7 = vadd.f32 %v438_v44, %v430_v26  ;;  %v450_v61 = vadd.f32 %v449_v5, %v431_v12  ;;  %v614_v20 = vmul.f32 %v598_v56, %v1184_v10  ;;  %v615_v24 = vmul.f32 %v599_v29, %v1184_v10 }
  0xb9   : > { %v460_v62 = vadd.f32 %v459_v18, %v432_v36  ;;  %v470_v63 = vadd.f32 %v469_v16, %v433_v39  ;;  %v616_v22 = vmul.f32 %v600_v57, %v1184_v10  ;;  %v617_v49 = vmul.f32 %v601_v30, %v1184_v10 }
  0xba   : > { %v442_v47 = vadd.f32 %v441_v8, %v439_v7  ;;  %v452_v25 = vadd.f32 %v451_v38, %v450_v61  ;;  %v618_v17 = vmul.f32 %v602_v59, %v415_v11  ;;  %v619_v50 = vmul.f32 %v603_v58, %v415_v11 }
  0xbb   : > { %v462_v21 = vadd.f32 %v461_v52, %v460_v62  ;;  %v472_v48 = vadd.f32 %v471_v53, %v470_v63  ;;  %v620_v16 = vmul.f32 %v604_v9, %v415_v11  ;;  %v621_v14 = vmul.f32 %v605_v60, %v415_v11 }
  0xbc   : > { %v443_v43 = vrot.slane %v442_v47, 4  ;;  %v453_v44 = vrot.slane %v452_v25, 4  ;;  %v622_v4 = vmul.f32 %v606_v2, %v1220_v28  ;;  %v623_v1 = vmul.f32 %v607_v3, %v1220_v28 }
  0xbd   : > { %v463_v5 = vrot.slane %v462_v21, 4  ;;  %v473_v18 = vrot.slane %v472_v48, 4  ;;  %v624_v51 = vmul.f32 %v608_v40, %v1220_v28  ;;  %v625_v10 = vmul.f32 %v609_v41, %v1220_v28 }
  0xbe   : > { %v444_v8 = vadd.f32 %v443_v43, %v442_v47  ;;  %v454_v38 = vadd.f32 %v453_v44, %v452_v25  ;;  %v626_v55 = vadd.f32 %v614_v20, %v610_v42  ;;  %v628_v45 = vsel %vm440_vm0, %v622_v4, 0.0 }
  0xbf   : > { %v464_v52 = vadd.f32 %v463_v5, %v462_v21  ;;  %v474_v53 = vadd.f32 %v473_v18, %v472_v48  ;;  %v636_v56 = vadd.f32 %v615_v24, %v611_v6  ;;  %v638_v29 = vsel %vm440_vm0, %v623_v1, 0.0 }
  0xc0   : > { %v445_v46 = vrot.slane %v444_v8, 2  ;;  %v455_v19 = vrot.slane %v454_v38, 2  ;;  %v627_v27 = vadd.f32 %v626_v55, %v618_v17  ;;  %v646_v57 = vadd.f32 %v616_v22, %v612_v0 }
  0xc1   : > { %v465_v32 = vrot.slane %v464_v52, 2  ;;  %v475_v33 = vrot.slane %v474_v53, 2  ;;  %v637_v9 = vadd.f32 %v636_v56, %v619_v50  ;;  %v648_v2 = vsel %vm440_vm0, %v624_v51, 0.0 }
  0xc2   : > { %v446_v30 = vadd.f32 %v445_v46, %v444_v8  ;;  %v456_v59 = vadd.f32 %v455_v19, %v454_v38  ;;  %v629_v28 = vadd.f32 %v628_v45, %v627_v27  ;;  %v647_v60 = vadd.f32 %v646_v57, %v620_v16 }
  0xc3   : > { %v466_v58 = vadd.f32 %v465_v32, %v464_v52  ;;  %v476_v11 = vadd.f32 %v475_v33, %v474_v53  ;;  %v639_v35 = vadd.f32 %v638_v29, %v637_v9  ;;  %v656_v13 = vadd.f32 %v617_v49, %v613_v23 }
  0xc4   : > { %v447_v3 = vrot.slane %v446_v30, 1  ;;  %v457_v31 = vrot.slane %v456_v59, 1  ;;  %v630_v12 = vrot.slane %v629_v28, 4  ;;  %v649_v36 = vadd.f32 %v648_v2, %v647_v60 }
  0xc5   : > { %v467_v26 = vrot.slane %v466_v58, 1  ;;  %v477_v34 = vrot.slane %v476_v11, 1  ;;  %v640_v6 = vrot.slane %v639_v35, 4  ;;  %v657_v61 = vadd.f32 %v656_v13, %v621_v14 }
  0xc6   : > { %v448_v37 = vadd.f32 %v447_v3, %v446_v30  ;;  %v458_v39 = vadd.f32 %v457_v31, %v456_v59  ;;  %v631_v42 = vadd.f32 %v630_v12, %v629_v28  ;;  %v650_v7 = vrot.slane %v649_v36, 4 }
  0xc7   : > { %v468_v40 = vadd.f32 %v467_v26, %v466_v58  ;;  %v478_v41 = vadd.f32 %v477_v34, %v476_v11  ;;  %v641_v23 = vadd.f32 %v640_v6, %v639_v35  ;;  %v658_v25 = vsel %vm440_vm0, %v625_v10, 0.0 }
  0xc8   : > { %v480_v62 = vadd.f32 %v1239_v54, %v448_v37  ;;  %v481_v63 = vadd.f32 %v1239_v54, %v458_v39  ;;  %v632_v24 = vrot.slane %v631_v42, 2  ;;  %v651_v47 = vadd.f32 %v650_v7, %v649_v36 }
  0xc9   : > { %v482_v0 = vadd.f32 %v1239_v54, %v468_v40  ;;  %v483_v20 = vadd.f32 %v1239_v54, %v478_v41  ;;  %v659_v49 = vadd.f32 %v658_v25, %v657_v61  ;;  %vm1289_vm4 = vcmp.lt.s32.totalorder %v498_v15, 512 }
  0xca   : > { %v488_v21 = vrot.slane %v481_v63, 7  ;;  %v642_v50 = vrot.slane %v641_v23, 2  ;;  %v652_v43 = vrot.slane %v651_v47, 2  ;;  %v633_v18 = vadd.f32 %v632_v24, %v631_v42 }
  0xcb   : > { %v489_v48 = vrot.slane %v482_v0, 6  ;;  %v490_v22 = vrot.slane %v483_v20, 5  ;;  %v660_v16 = vrot.slane %v659_v49, 4 }
  0xcc   : > { %v492_v44 = vsel %vm491_vm1, %v480_v62, %v488_v21  ;;  %v643_v4 = vadd.f32 %v642_v50, %v641_v23  ;;  %v653_v1 = vadd.f32 %v652_v43, %v651_v47  ;;  %v634_v52 = vrot.slane %v633_v18, 1 }
  0xcd   : > { %v494_v5 = vsel %vm493_vm2, %v489_v48, %v490_v22  ;;  %v661_v15 = vadd.f32 %v660_v16, %v659_v49 }
  0xce   : > { %v496_v14 = vsel %vm495_vm3, %v492_v44, %v494_v5  ;;  %v644_v8 = vrot.slane %v643_v4, 1  ;;  %v654_v38 = vrot.slane %v653_v1, 1  ;;  %v635_v46 = vadd.f32 %v634_v52, %v633_v18 }
  0xcf   : > { %502 = vst.msk [vmem:[%s219_s26] sm:$0xf] %vm1289_vm4, %v496_v14  ;;  %v662_v53 = vrot.slane %v661_v15, 2 }
  0xd0   : > { %v645_v51 = vadd.f32 %v644_v8, %v643_v4  ;;  %v655_v10 = vadd.f32 %v654_v38, %v653_v1  ;;  %v666_v56 = vadd.f32 %v635_v46, %v1239_v54 }
  0xd1   : > { %v663_v55 = vadd.f32 %v662_v53, %v661_v15 }
  0xd2   : > { %v667_v45 = vadd.f32 %v645_v51, %v1239_v54  ;;  %v668_v32 = vadd.f32 %v655_v10, %v1239_v54 }
  0xd3   : > { %v664_v19 = vrot.slane %v663_v55, 1 }
  0xd4   : > { %v674_v27 = vrot.slane %v667_v45, 7  ;;  %v675_v57 = vrot.slane %v668_v32, 6 }
  0xd5   : > { %v665_v33 = vadd.f32 %v664_v19, %v663_v55 }
  0xd6   : > { %v677_v59 = vsel %vm491_vm1, %v666_v56, %v674_v27 }
  0xd7   : > { %v669_v29 = vadd.f32 %v665_v33, %v1239_v54 }
  0xd9   : > { %v676_v30 = vrot.slane %v669_v29, 5 }
  0xdb   : > { %v678_v58 = vsel %vm493_vm2, %v675_v57, %v676_v30 }
  0xdc   : > { %v679_v11 = vsel %vm495_vm3, %v677_v59, %v678_v58 }
  0xdd   : > { %766 = vst.msk [vmem:[%s219_s26 + $0x4] sm:$0xf] %vm1289_vm4, %v679_v11 }
  0xde   : > { %846 = shalt.err (!%p843_p3)
}
  0xdf   : > { %771 = dma.vmem_to_hbm [thread:$0]  (%p955_p5), %s697_s8, 128, %s699_s9, %s684_s10  }
  0xe0 PF: > { %p777_p4 = scmp.ge.s32.totalorder %s881_s23, 2  ;;  %s710_s18 = sand.u32 1, %s869_s20  }
  0xe1   : > { %s711_s4 = scalar_lea.sflag [#allocation4], %s710_s18 }
  0xe2   : > { %p774_p7 = pnand %p777_p4, %p959_p6 }
  0xe4   : > { %p775_p8 = pneg %p774_p7 }
  0xe6   : > { %864 = dma.done.wait (%p775_p8), %s711_s4, 128  }
  0xe7   : > { %866 = vsyncadd (%p775_p8), %s711_s4, 4294967168  ;;  %p16_p9 = scmp.ge.s32.totalorder %s941_s25, 4   ;;  %s1360_s20 = smov %s873_s21 }
  0xe8   : > { %s1361_s21 = smov %s877_s22  ;;  %s1362_s22 = smov %s953_s28 }
  0xe9   : > { %s1363_s23 = smov %s941_s25  ;;  %18 = sbr.rel (!%p16_p9) target bundleno = 5 (0x5), region = 77 }
  0xee   :  { %717 = vsyncpa [#allocation4], 1 }
  0xef   :  { %719 = vsyncpa [#allocation4 + $0x1], 1 }

</bundles_post_ra>
